<compile_context>
chip_gen: v5e
topology: v5e:2x2
jax: 0.10.0
libtpu: 0.0.40
codegen_flags: <defaults>
</compile_context>

<pallas_src>
import jax
import jax.numpy as jnp
from jax.experimental import pallas as pl
from jax.experimental.pallas import tpu as pltpu


def _identity_decoder_kernel(x_ref, o_ref):
    # Pure full-tile VMEM copy: (tile_rows, lanes) -> (tile_rows, lanes).
    o_ref[...] = x_ref[...]


def _lane_dense_view(n: int, d: int) -> tuple[int, int]:
    """Pick a (rows, lanes) reshape of the (n, d) payload with lanes a large
    multiple of 128 (unmasked vst), falling back to (n, d) if not possible."""
    total = n * d
    for lanes in (512, 256, 128):
        if total % lanes == 0:
            return total // lanes, lanes
    return n, d


def _choose_tile_rows(num_rows: int, lanes: int, itemsize: int) -> int:
    """Rows per tile such that live block bytes (2 input + 2 output buffers,
    double-buffered) stay well inside scoped VMEM on every TPU generation
    (v7x has only 64 MiB physical / 32 MiB default scoped)."""
    budget_bytes = 8 << 20  # ~8 MiB of live blocks -> comfortable everywhere
    max_rows = max(8, budget_bytes // (4 * lanes * itemsize))
    if num_rows <= max_rows:
        return num_rows  # single full-extent block (always legal)
    tile = (max_rows // 8) * 8
    # Prefer a tile that divides the row count exactly (no masked edge tile).
    t = tile
    while t >= 8:
        if num_rows % t == 0:
            return t
        t -= 8
    return tile


def _identity_decoder_pallas(x: jnp.ndarray, num_decoders: int) -> jnp.ndarray:
    n, d = x.shape
    itemsize = jnp.dtype(x.dtype).itemsize

    rows, lanes = _lane_dense_view(n, d)
    x2d = x.reshape(rows, lanes)  # row-major reshape: pure layout plumbing

    tile_rows = _choose_tile_rows(rows, lanes, itemsize)
    num_row_tiles = pl.cdiv(rows, tile_rows)

    out = pl.pallas_call(
        _identity_decoder_kernel,
        out_shape=jax.ShapeDtypeStruct((num_decoders, rows, lanes), x.dtype),
        grid_spec=pltpu.PrefetchScalarGridSpec(
            num_scalar_prefetch=0,
            # Decoder axis is the fastest-varying (last) grid axis; the input
            # block index is constant across it, so each input row-tile is
            # fetched once and reused for all num_decoders output writes.
            grid=(num_row_tiles, num_decoders),
            in_specs=[pl.BlockSpec((tile_rows, lanes), lambda t, i: (t, 0))],
            out_specs=pl.BlockSpec(
                (pl.Squeezed(), tile_rows, lanes), lambda t, i: (i, t, 0)
            ),
        ),
        compiler_params=pltpu.CompilerParams(
            dimension_semantics=("parallel", "parallel"),
            vmem_limit_bytes=32 << 20,
        ),
        cost_estimate=pl.CostEstimate(
            flops=0,
            transcendentals=0,
            bytes_accessed=(1 + num_decoders) * n * d * itemsize,
        ),
    )(x2d)
    return out.reshape(num_decoders, n, d)


# Below this payload size a lazy broadcast beats kernel launch overhead.
_SMALL_BYTES = 1 << 16


def identity_decoder(
    x: jnp.ndarray, num_decoders: int, *, force_pallas: bool = False
) -> jnp.ndarray:
    """Pallas equivalent of IdentityDecoder.forward(x) for 2-D x."""
    n, d = x.shape
    if (not force_pallas
            and n * d * jnp.dtype(x.dtype).itemsize < _SMALL_BYTES):
        # Tiny input: let XLA fuse the (free) broadcast downstream.
        return jnp.broadcast_to(x[None, :, :], (num_decoders, n, d))
    return _identity_decoder_pallas(x, num_decoders)


if __name__ == "__main__":
    # IdentityDecoder has no learnable parameters (num_decoders only).
    num_decoders = 3
    seq, hidden = 8, 32  # small (seq, hidden) feature map

    key = jax.random.PRNGKey(0)
    x = jax.random.normal(key, (seq, hidden), dtype=jnp.float32)

    # Exercise the actual Pallas kernel (test shape would otherwise take the
    # small-input bypass).
    out = identity_decoder(x, num_decoders, force_pallas=True)
    out = jax.block_until_ready(out)

    # Reference: torch x.repeat((num_decoders, 1, 1)) for 2-D x.
    ref = jnp.broadcast_to(x[None, :, :], (num_decoders, seq, hidden))
    assert out.shape == (num_decoders, seq, hidden)
    assert jnp.array_equal(out, ref)

    # Also check the size-based dispatch path (lazy broadcast for tiny x).
    out_dispatch = jax.block_until_ready(identity_decoder(x, num_decoders))
    assert jnp.array_equal(out_dispatch, ref)

    print("KERNEL_OK")
</pallas_src>

<mosaic_0001>
module attributes {stable_mosaic.version = 11 : i64} {
  func.func @_identity_decoder_kernel(%arg0: i32, %arg1: i32, %arg2: memref<1x256xf32, #tpu.memory_space<vmem>>, %arg3: memref<1x1x256xf32, #tpu.memory_space<vmem>>) attributes {dimension_semantics = [#tpu.dimension_semantics<parallel>, #tpu.dimension_semantics<parallel>], iteration_bounds = array<i64: 1, 3>, scalar_prefetch = 0 : i64, scratch_operands = 0 : i64, tpu.core_type = #tpu.core_type<tc>, window_params = [{transform_indices = @transform_0, window_bounds = array<i64: 1, 256>}, {transform_indices = @transform_1, window_bounds = array<i64: 1, 1, 256>}]} {
    %c0 = arith.constant 0 : index
    %c0_0 = arith.constant 0 : index
    %0 = vector.load %arg2[%c0, %c0_0] : memref<1x256xf32, #tpu.memory_space<vmem>>, vector<1x256xf32>
    %c0_1 = arith.constant 0 : index
    %c0_2 = arith.constant 0 : index
    %c0_3 = arith.constant 0 : index
    %1 = vector.load %arg3[%c0_1, %c0_2, %c0_3] : memref<1x1x256xf32, #tpu.memory_space<vmem>>, vector<1x1x256xf32>
    %2 = vector.shape_cast %1 : vector<1x1x256xf32> to vector<1x256xf32>
    %3 = vector.shape_cast %0 : vector<1x256xf32> to vector<1x1x256xf32>
    tpu.vector_store %arg3[%c0_1, %c0_2, %c0_3], %3 {strides = array<i32>} : memref<1x1x256xf32, #tpu.memory_space<vmem>>, vector<1x1x256xf32>,
    return
  }
  func.func @transform_0(%arg0: i32, %arg1: i32) -> (i32, i32) {
    %c0_i32 = arith.constant 0 : i32
    %c0_i32_0 = arith.constant 0 : i32
    return %arg0, %c0_i32 : i32, i32
  }
  func.func @transform_1(%arg0: i32, %arg1: i32) -> (i32, i32, i32) {
    %c0_i32 = arith.constant 0 : i32
    %c0_i32_0 = arith.constant 0 : i32
    return %arg1, %arg0, %c0_i32 : i32, i32, i32
  }
}

</mosaic_0001>

<bundles_post_ra>
// kernel: tpu_custom_call.1
= control target key start
LH: loop header
LB: loop body
LE: loop exit
PB: predicated region body
PF: predicated region fallthrough
CT: control target
= control target key end

     0   :  { %6 = vsyncpa [#allocation3], 0  ;;  %s523_s0 = inlined_call_operand.hbm [shape: f32[1,256], index: 0, kind: input, shape index: {}]   ;;  %s524_s1 = inlined_call_operand.hbm [shape: f32[3,1,256], index: 1, kind: output, shape index: {}]  }
   0x1   :  { %7 = vsyncpa [#allocation4], 0 }
   0x2   :  { %9 = vsyncpa [#allocation4 + $0x1], 0  ;;  %s428_s6 = smov 0   ;;  %s430_s7 = smov 0  }
   0x3   :  { %s432_s8 = smov 0   ;;  %s434_s9 = smov 0  }
   0x4   :  { %s436_s10 = smov 0   ;;  %s438_s11 = smov 0  }
   0x5 LB: > { %s226_s12 = sadd.s32 4294967295, %s415_s11   ;;  %s227_s13 = sadd.s32 4294967294, %s415_s11   ;;  %s415_s11 = sphi %s438_s11, %s15_s11   ;;  %s411_s10 = sphi %s436_s10, %s531_s10   ;;  %s407_s9 = sphi %s434_s9, %s530_s9   ;;  %s403_s8 = sphi %s432_s8, %s529_s8   ;;  %s399_s7 = sphi %s430_s7, %s528_s7   ;;  %s395_s6 = sphi %s428_s6, %s527_s6  }
   0x6   : > { %s24_s14 = sadd.s32 1, %s411_s10  ;;  %s62_s15 = sadd.s32 1, %s403_s8 }
   0x7   : > { %p25_p0 = scmp.ge.s32.totalorder %s24_s14, 3  ;;  %p72_p1 = scmp.ne.s32.totalorder %s403_s8, %s399_s7 }
   0x8   : > { %p73_p2 = scmp.eq.s32.totalorder %s226_s12, 2  ;;  %p78_p3 = scmp.ne.s32.totalorder %s399_s7, %s395_s6 }
   0x9   : > { %s533_s14 = smov (%p25_p0, %s24_s14), 0  ;;  %p79_p5 = scmp.eq.s32.totalorder %s227_s13, 2 }
   0xa   : > { %p468_p4 = por %p73_p2, %p72_p1  ;;  %s57_s17 = ssub.s32 %s411_s10, %s533_s14 }
   0xb   : > { %p228_p6 = scmp.ge.s32.totalorder %s415_s11, 1  ;;  %p60_p7 = scmp.eq.s32.totalorder %s57_s17, 0 }
   0xc   : > { %p475_p8 = por %p79_p5, %p78_p3  ;;  %p86_p9 = scmp.lt.s32.totalorder %s415_s11, 4 }
   0xd   : > { %s481_s19 = scalar_select %p60_p7, %s403_s8, %s62_s15  }
   0xe   : > { %p87_p10 = pnand %p228_p6, %p86_p9  ;;  %p251_p11 = scmp.eq.s32.totalorder %s226_s12, 0 }
   0xf   : > { %s100_s22 = sshll.u32 %s523_s0, 4  ;;  %s417_s23 = smov [#allocation2]   ;;  %s101_s22 = int_to_ptr.hbm [resolvable:$true] %s100_s22 }
  0x10   : > { %p243_p12 = pneg %p87_p10  ;;  %s102_s24 = sshll.u32 %s417_s23, 4  ;;  %s103_s24 = int_to_ptr.vmem [resolvable:$true] %s102_s24 }
  0x11   : > { %115 = sbr.rel (%p87_p10) target bundleno = 39 (0x27), region = 24 }
  0x12   : > { %p244_p13 = pnand %p251_p11, %p243_p12 }
  0x14   : > { %246 = dma.hbm_to_vmem [thread:$0]  (!%p244_p13), %s101_s22, 32, %s103_s24, [#allocation3]  }
  0x16   : > { %386 = dma.done.wait (%p251_p11), [#allocation3], 32  }
  0x17   : > { %388 = vsyncadd (%p251_p11), [#allocation3], 4294967264  ;;  %s128_s25 = sand.u32 1, %s399_s7   ;;  %s234_s26 = sshll.u32 %s407_s9, 1  ;;  %v132_v0 = vlaneseq  ;;  %v131_v1 = vld [vmem:[#allocation2] sm:$0x3] }
  0x18   : > { %s232_s27 = sshll.u32 %s128_s25, 1  ;;  %s150_s30 = scalar_lea.hbm %s524_s1, %s234_s26 }
  0x19   : > { %s130_s2 = scalar_lea.vmem [#allocation5], %s232_s27  ;;  %s154_s4 = sshll.u32 %s150_s30, 4  ;;  %vm134_vm0 = vcmp.lt.s32.totalorder %v132_v0, 256  ;;  %s155_s4 = int_to_ptr.hbm [resolvable:$true] %s154_s4 }
  0x1a   : > { %s152_s3 = sshll.u32 %s130_s2, 4  ;;  %136 = vst.msk [vmem:[%s130_s2] sm:$0x3] %vm134_vm0, %v131_v1  ;;  %s138_s5 = scalar_lea.sflag [#allocation4], %s128_s25  ;;  %s153_s3 = int_to_ptr.vmem [resolvable:$true] %s152_s3 }
  0x1b   : > { %s347_s12 = sshra.s32 %s155_s4, 4  ;;  %s353_s17 = scalar_lea.hbm %s524_s1, 6  ;;  %s348_s12 = int_to_ptr.hbm [resolvable:$true] %s347_s12 }
  0x1c   : > { %s349_s13 = scalar_lea.hbm %s348_s12, 2  ;;  %p354_p3 = scmp.lt.s32.totalorder %s348_s12, %s524_s1 }
  0x1d   : > { %p350_p0 = scmp.ne.s32.totalorder %s348_s12, %s349_s13  ;;  %p355_p5 = scmp.lt.s32.totalorder %s353_s17, %s349_s13 }
  0x1f   : > { %p351_p1 = pnand %p350_p0, %p468_p4  ;;  %p356_p6 = por %p355_p5, %p354_p3 }
  0x21   : > { %p352_p2 = pneg %p351_p1 }
  0x23   : > { %p357_p7 = pnand %p356_p6, %p352_p2 }
  0x25   : > { %360 = shalt.err (!%p357_p7)
}
  0x26   : > { %241 = dma.vmem_to_hbm [thread:$0]  (%p468_p4), %s153_s3, 32, %s155_s4, %s138_s5  }
  0x27 PF: > { %p253_p9 = scmp.ge.s32.totalorder %s415_s11, 2  ;;  %s166_s22 = sand.u32 1, %s395_s6  }
  0x28   : > { %s167_s23 = scalar_lea.sflag [#allocation4], %s166_s22 }
  0x29   : > { %p248_p10 = pnand %p253_p9, %p475_p8 }
  0x2b   : > { %p249_p11 = pneg %p248_p10 }
  0x2d   : > { %390 = dma.done.wait (%p249_p11), %s167_s23, 32  }
  0x2e   : > { %392 = vsyncadd (%p249_p11), %s167_s23, 4294967264  ;;  %s15_s11 = sadd.s32 1, %s415_s11   ;;  %s527_s6 = smov %s399_s7 }
  0x2f   : > { %p12_p12 = scmp.ge.s32.totalorder %s15_s11, 5   ;;  %s528_s7 = smov %s403_s8 }
  0x30   : > { %s529_s8 = smov %s481_s19  ;;  %s530_s9 = smov %s411_s10 }
  0x31   : > { %s531_s10 = smov %s533_s14  ;;  %14 = sbr.rel (!%p12_p12) target bundleno = 5 (0x5), region = 62 }
  0x36   :  { %173 = vsyncpa [#allocation3], 1 }
  0x37   :  { %175 = vsyncpa [#allocation3 + $0x1], 1 }
  0x38   :  { %176 = vsyncpa [#allocation4], 1 }
  0x39   :  { %178 = vsyncpa [#allocation4 + $0x1], 1 }

</bundles_post_ra>
